<compile_context>
chip_gen: v7x
topology: tpu7x:2x2x1
jax: 0.10.0
libtpu: 0.0.40
codegen_flags: <defaults>
</compile_context>

<pallas_src>
import jax
import jax.numpy as jnp
import numpy as np
from jax.experimental import pallas as pl
from jax.experimental.pallas import tpu as pltpu


def _make_ncgm_kernel(L_pad, nei, d_in, hid, block_l):
    def kernel(x_ref, w1_ref, b1_ref, w2_ref, out_ref):
        # x_ref : (nei, d_in, block_l)   w1_ref: (hid, d_in)
        # b1_ref: (hid, 1)               w2_ref: (hid, 1)
        # out_ref: (nei, block_l)        -- L on lanes, nei on sublanes
        w1 = w1_ref[...]
        b1 = b1_ref[...]
        w2 = w2_ref[...]

        rows = []
        for n in range(nei):            # static unroll; nei is tiny (8)
            # fc1 on the MXU: (hid, d_in) @ (d_in, block_l) -> (hid, block_l)
            h = jnp.tanh(
                jnp.dot(w1, x_ref[n], preferred_element_type=jnp.float32) + b1)
            # fc2 as VPU multiply + sublane reduction over hid (no reshape).
            # fc2 bias omitted: it cancels in the softmax over neighbors.
            rows.append(jnp.sum(h * w2, axis=0, keepdims=True))   # (1, block_l)
        lgt = jnp.concatenate(rows, axis=0)                       # (nei, block_l)

        # Softmax over the neighbor (sublane) axis, lane-dense throughout.
        m = jnp.max(lgt, axis=0, keepdims=True)                   # (1, block_l)
        e = jnp.exp(lgt - m)
        s = jnp.sum(e, axis=0, keepdims=True)
        # One reciprocal per column instead of nei divides (exact form keeps
        # the 1e-5 tolerance; flip to approx=True if looser tolerance is ok).
        out_ref[...] = e * pl.reciprocal(s, approx=False)

    grid = (L_pad // block_l,)
    return pl.pallas_call(
        kernel,
        out_shape=jax.ShapeDtypeStruct((nei, L_pad), jnp.float32),
        grid_spec=pltpu.PrefetchScalarGridSpec(
            num_scalar_prefetch=0,
            grid=grid,
            in_specs=[
                pl.BlockSpec((nei, d_in, block_l), lambda i: (0, 0, i)),  # x
                pl.BlockSpec((hid, d_in), lambda i: (0, 0)),              # w1
                pl.BlockSpec((hid, 1), lambda i: (0, 0)),                 # b1
                pl.BlockSpec((hid, 1), lambda i: (0, 0)),                 # w2
            ],
            out_specs=pl.BlockSpec((nei, block_l), lambda i: (0, i)),
        ),
        compiler_params=pltpu.CompilerParams(
            dimension_semantics=("parallel",)),
    )


def _pick_block_l(L):
    # Lane tile over L: a multiple of 128, large enough to amortize the
    # ~0.35 us per-grid-step overhead, small enough to keep >= 2 grid steps
    # once L is large enough to split across v7x's two TensorCores.
    if L < 256:
        return 128
    return min(512, max(128, (L // 2 // 128) * 128))


def ncgm_forward(x, fc1_w, fc1_b, fc2_w, fc2_b, *, block_l=None):
    """x: (L, nei, input_size); fc1_w: (hid, input_size); fc1_b: (hid,);
    fc2_w: (1, hid); fc2_b: (1,).  Returns theta: (L, nei).

    fc2_b is accepted for interface fidelity but not passed to the kernel:
    under the softmax over the neighbor axis it is an exact no-op."""
    L, nei, d_in = x.shape
    hid = fc1_w.shape[0]
    if block_l is None:
        block_l = _pick_block_l(L)
    block_l = max(128, (block_l // 128) * 128)
    L_pad = pl.cdiv(L, block_l) * block_l

    # Lane-dense activation layout: (nei, d_in, L_pad), L on the lane axis.
    xT = jnp.transpose(x, (1, 2, 0)).astype(jnp.float32)        # (nei, d_in, L)
    if L_pad != L:
        xT = jnp.pad(xT, ((0, 0), (0, 0), (0, L_pad - L)))      # zero-pad L

    w1 = fc1_w.astype(jnp.float32)                   # (hid, d_in), untransposed
    b1c = fc1_b.reshape(hid, 1).astype(jnp.float32)              # (hid, 1)
    w2c = fc2_w.reshape(hid, 1).astype(jnp.float32)              # (hid, 1)

    fn = _make_ncgm_kernel(L_pad, nei, d_in, hid, block_l)
    theta_t = fn(xT, w1, b1c, w2c)                               # (nei, L_pad)
    return theta_t[:, :L].T                                      # (L, nei)


def ncgm_reference(x, fc1_w, fc1_b, fc2_w, fc2_b):
    h = jnp.tanh(x @ fc1_w.T + fc1_b)            # (L, nei, hid)
    o = h @ fc2_w.T + fc2_b                      # (L, nei, 1)  (b2 kept here)
    o = jax.nn.softmax(o, axis=1)                # softmax over nei
    return jnp.squeeze(o)                        # (L, nei)


if __name__ == "__main__":
    # Module hyper-parameters (small, consistent with the forward pass).
    input_size = 4
    hidden_size = 32
    time_size = 5
    location_size = 16   # L
    neighbor_size = 8    # nei

    key = jax.random.PRNGKey(0)
    k_x, k_w1, k_b1, k_w2, k_b2, k_x2 = jax.random.split(key, 6)

    # Deterministic synthetic parameters (PyTorch-Linear-like uniform init).
    bound1 = 1.0 / np.sqrt(input_size)
    fc1_w = jax.random.uniform(k_w1, (hidden_size, input_size),
                               minval=-bound1, maxval=bound1, dtype=jnp.float32)
    fc1_b = jax.random.uniform(k_b1, (hidden_size,),
                               minval=-bound1, maxval=bound1, dtype=jnp.float32)
    bound2 = 1.0 / np.sqrt(hidden_size)
    fc2_w = jax.random.uniform(k_w2, (1, hidden_size),
                               minval=-bound2, maxval=bound2, dtype=jnp.float32)
    fc2_b = jax.random.uniform(k_b2, (1,),
                               minval=-bound2, maxval=bound2, dtype=jnp.float32)

    # Z parameter exists in the module but is unused in forward().
    Z = jnp.ones((time_size - 1, location_size, neighbor_size), jnp.float32)

    # --- module-sized case (L=16 padded to one 128-wide lane tile) ---
    x = jax.random.normal(k_x, (location_size, neighbor_size, input_size),
                          dtype=jnp.float32)
    theta = jax.block_until_ready(ncgm_forward(x, fc1_w, fc1_b, fc2_w, fc2_b))
    ref = ncgm_reference(x, fc1_w, fc1_b, fc2_w, fc2_b)
    np.testing.assert_allclose(np.asarray(theta), np.asarray(ref),
                               rtol=1e-5, atol=1e-5)
    assert theta.shape == (location_size, neighbor_size)

    # --- larger case exercising the multi-grid-step ("parallel" L axis) path ---
    L_big = 512
    x_big = jax.random.normal(k_x2, (L_big, neighbor_size, input_size),
                              dtype=jnp.float32)
    theta_big = jax.block_until_ready(
        ncgm_forward(x_big, fc1_w, fc1_b, fc2_w, fc2_b))  # block_l=256 -> grid=2
    ref_big = ncgm_reference(x_big, fc1_w, fc1_b, fc2_w, fc2_b)
    np.testing.assert_allclose(np.asarray(theta_big), np.asarray(ref_big),
                               rtol=1e-5, atol=1e-5)

    print("KERNEL_OK")
</pallas_src>

<mosaic_0001>
module attributes {stable_mosaic.version = 11 : i64} {
  func.func @kernel(%arg0: i32, %arg1: memref<8x4x128xf32, #tpu.memory_space<vmem>>, %arg2: memref<32x4xf32, #tpu.memory_space<vmem>>, %arg3: memref<32x1xf32, #tpu.memory_space<vmem>>, %arg4: memref<32x1xf32, #tpu.memory_space<vmem>>, %arg5: memref<8x128xf32, #tpu.memory_space<vmem>>) attributes {dimension_semantics = [#tpu.dimension_semantics<parallel>], iteration_bounds = array<i64: 1>, scalar_prefetch = 0 : i64, scratch_operands = 0 : i64, tpu.core_type = #tpu.core_type<tc>, window_params = [{transform_indices = @transform_0, window_bounds = array<i64: 8, 4, 128>}, {pipeline_mode = #tpu.pipeline_mode<synchronous>, transform_indices = @transform_1, window_bounds = array<i64: 32, 4>}, {pipeline_mode = #tpu.pipeline_mode<synchronous>, transform_indices = @transform_2, window_bounds = array<i64: 32, 1>}, {pipeline_mode = #tpu.pipeline_mode<synchronous>, transform_indices = @transform_3, window_bounds = array<i64: 32, 1>}, {transform_indices = @transform_4, window_bounds = array<i64: 8, 128>}]} {
    %c0 = arith.constant 0 : index
    %c0_0 = arith.constant 0 : index
    %0 = vector.load %arg2[%c0, %c0_0] : memref<32x4xf32, #tpu.memory_space<vmem>>, vector<32x4xf32>
    %c0_1 = arith.constant 0 : index
    %c0_2 = arith.constant 0 : index
    %1 = vector.load %arg3[%c0_1, %c0_2] : memref<32x1xf32, #tpu.memory_space<vmem>>, vector<32x1xf32>
    %c0_3 = arith.constant 0 : index
    %c0_4 = arith.constant 0 : index
    %2 = vector.load %arg4[%c0_3, %c0_4] : memref<32x1xf32, #tpu.memory_space<vmem>>, vector<32x1xf32>
    %c0_5 = arith.constant 0 : index
    %c0_6 = arith.constant 0 : index
    %c0_7 = arith.constant 0 : index
    %3 = vector.load %arg1[%c0_5, %c0_6, %c0_7] : memref<8x4x128xf32, #tpu.memory_space<vmem>>, vector<1x4x128xf32>
    %4 = vector.shape_cast %3 : vector<1x4x128xf32> to vector<4x128xf32>
    %cst = arith.constant dense<0.000000e+00> : vector<32x128xf32>
    %5 = tpu.matmul %0, %4, %cst {dimension_numbers = #tpu.dot_dimension_numbers<[1], [0], [0], [1], [0, 0, 1, 1], [], []>} : vector<32x4xf32>, vector<4x128xf32>, vector<32x128xf32> -> vector<32x128xf32>
    %6 = vector.broadcast %1 : vector<32x1xf32> to vector<32x128xf32>
    %7 = arith.addf %5, %6 : vector<32x128xf32>
    %8 = math.tanh %7 : vector<32x128xf32>
    %9 = vector.broadcast %2 : vector<32x1xf32> to vector<32x128xf32>
    %10 = arith.mulf %8, %9 : vector<32x128xf32>
    %cst_8 = arith.constant dense<0.000000e+00> : vector<128xf32>
    %11 = vector.multi_reduction <add>, %10, %cst_8 [0] : vector<32x128xf32> to vector<128xf32>
    %12 = vector.shape_cast %11 : vector<128xf32> to vector<1x128xf32>
    %c1 = arith.constant 1 : index
    %c0_9 = arith.constant 0 : index
    %c0_10 = arith.constant 0 : index
    %13 = vector.load %arg1[%c1, %c0_9, %c0_10] : memref<8x4x128xf32, #tpu.memory_space<vmem>>, vector<1x4x128xf32>
    %14 = vector.shape_cast %13 : vector<1x4x128xf32> to vector<4x128xf32>
    %cst_11 = arith.constant dense<0.000000e+00> : vector<32x128xf32>
    %15 = tpu.matmul %0, %14, %cst_11 {dimension_numbers = #tpu.dot_dimension_numbers<[1], [0], [0], [1], [0, 0, 1, 1], [], []>} : vector<32x4xf32>, vector<4x128xf32>, vector<32x128xf32> -> vector<32x128xf32>
    %16 = vector.broadcast %1 : vector<32x1xf32> to vector<32x128xf32>
    %17 = arith.addf %15, %16 : vector<32x128xf32>
    %18 = math.tanh %17 : vector<32x128xf32>
    %19 = vector.broadcast %2 : vector<32x1xf32> to vector<32x128xf32>
    %20 = arith.mulf %18, %19 : vector<32x128xf32>
    %cst_12 = arith.constant dense<0.000000e+00> : vector<128xf32>
    %21 = vector.multi_reduction <add>, %20, %cst_12 [0] : vector<32x128xf32> to vector<128xf32>
    %22 = vector.shape_cast %21 : vector<128xf32> to vector<1x128xf32>
    %c2 = arith.constant 2 : index
    %c0_13 = arith.constant 0 : index
    %c0_14 = arith.constant 0 : index
    %23 = vector.load %arg1[%c2, %c0_13, %c0_14] : memref<8x4x128xf32, #tpu.memory_space<vmem>>, vector<1x4x128xf32>
    %24 = vector.shape_cast %23 : vector<1x4x128xf32> to vector<4x128xf32>
    %cst_15 = arith.constant dense<0.000000e+00> : vector<32x128xf32>
    %25 = tpu.matmul %0, %24, %cst_15 {dimension_numbers = #tpu.dot_dimension_numbers<[1], [0], [0], [1], [0, 0, 1, 1], [], []>} : vector<32x4xf32>, vector<4x128xf32>, vector<32x128xf32> -> vector<32x128xf32>
    %26 = vector.broadcast %1 : vector<32x1xf32> to vector<32x128xf32>
    %27 = arith.addf %25, %26 : vector<32x128xf32>
    %28 = math.tanh %27 : vector<32x128xf32>
    %29 = vector.broadcast %2 : vector<32x1xf32> to vector<32x128xf32>
    %30 = arith.mulf %28, %29 : vector<32x128xf32>
    %cst_16 = arith.constant dense<0.000000e+00> : vector<128xf32>
    %31 = vector.multi_reduction <add>, %30, %cst_16 [0] : vector<32x128xf32> to vector<128xf32>
    %32 = vector.shape_cast %31 : vector<128xf32> to vector<1x128xf32>
    %c3 = arith.constant 3 : index
    %c0_17 = arith.constant 0 : index
    %c0_18 = arith.constant 0 : index
    %33 = vector.load %arg1[%c3, %c0_17, %c0_18] : memref<8x4x128xf32, #tpu.memory_space<vmem>>, vector<1x4x128xf32>
    %34 = vector.shape_cast %33 : vector<1x4x128xf32> to vector<4x128xf32>
    %cst_19 = arith.constant dense<0.000000e+00> : vector<32x128xf32>
    %35 = tpu.matmul %0, %34, %cst_19 {dimension_numbers = #tpu.dot_dimension_numbers<[1], [0], [0], [1], [0, 0, 1, 1], [], []>} : vector<32x4xf32>, vector<4x128xf32>, vector<32x128xf32> -> vector<32x128xf32>
    %36 = vector.broadcast %1 : vector<32x1xf32> to vector<32x128xf32>
    %37 = arith.addf %35, %36 : vector<32x128xf32>
    %38 = math.tanh %37 : vector<32x128xf32>
    %39 = vector.broadcast %2 : vector<32x1xf32> to vector<32x128xf32>
    %40 = arith.mulf %38, %39 : vector<32x128xf32>
    %cst_20 = arith.constant dense<0.000000e+00> : vector<128xf32>
    %41 = vector.multi_reduction <add>, %40, %cst_20 [0] : vector<32x128xf32> to vector<128xf32>
    %42 = vector.shape_cast %41 : vector<128xf32> to vector<1x128xf32>
    %c4 = arith.constant 4 : index
    %c0_21 = arith.constant 0 : index
    %c0_22 = arith.constant 0 : index
    %43 = vector.load %arg1[%c4, %c0_21, %c0_22] : memref<8x4x128xf32, #tpu.memory_space<vmem>>, vector<1x4x128xf32>
    %44 = vector.shape_cast %43 : vector<1x4x128xf32> to vector<4x128xf32>
    %cst_23 = arith.constant dense<0.000000e+00> : vector<32x128xf32>
    %45 = tpu.matmul %0, %44, %cst_23 {dimension_numbers = #tpu.dot_dimension_numbers<[1], [0], [0], [1], [0, 0, 1, 1], [], []>} : vector<32x4xf32>, vector<4x128xf32>, vector<32x128xf32> -> vector<32x128xf32>
    %46 = vector.broadcast %1 : vector<32x1xf32> to vector<32x128xf32>
    %47 = arith.addf %45, %46 : vector<32x128xf32>
    %48 = math.tanh %47 : vector<32x128xf32>
    %49 = vector.broadcast %2 : vector<32x1xf32> to vector<32x128xf32>
    %50 = arith.mulf %48, %49 : vector<32x128xf32>
    %cst_24 = arith.constant dense<0.000000e+00> : vector<128xf32>
    %51 = vector.multi_reduction <add>, %50, %cst_24 [0] : vector<32x128xf32> to vector<128xf32>
    %52 = vector.shape_cast %51 : vector<128xf32> to vector<1x128xf32>
    %c5 = arith.constant 5 : index
    %c0_25 = arith.constant 0 : index
    %c0_26 = arith.constant 0 : index
    %53 = vector.load %arg1[%c5, %c0_25, %c0_26] : memref<8x4x128xf32, #tpu.memory_space<vmem>>, vector<1x4x128xf32>
    %54 = vector.shape_cast %53 : vector<1x4x128xf32> to vector<4x128xf32>
    %cst_27 = arith.constant dense<0.000000e+00> : vector<32x128xf32>
    %55 = tpu.matmul %0, %54, %cst_27 {dimension_numbers = #tpu.dot_dimension_numbers<[1], [0], [0], [1], [0, 0, 1, 1], [], []>} : vector<32x4xf32>, vector<4x128xf32>, vector<32x128xf32> -> vector<32x128xf32>
    %56 = vector.broadcast %1 : vector<32x1xf32> to vector<32x128xf32>
    %57 = arith.addf %55, %56 : vector<32x128xf32>
    %58 = math.tanh %57 : vector<32x128xf32>
    %59 = vector.broadcast %2 : vector<32x1xf32> to vector<32x128xf32>
    %60 = arith.mulf %58, %59 : vector<32x128xf32>
    %cst_28 = arith.constant dense<0.000000e+00> : vector<128xf32>
    %61 = vector.multi_reduction <add>, %60, %cst_28 [0] : vector<32x128xf32> to vector<128xf32>
    %62 = vector.shape_cast %61 : vector<128xf32> to vector<1x128xf32>
    %c6 = arith.constant 6 : index
    %c0_29 = arith.constant 0 : index
    %c0_30 = arith.constant 0 : index
    %63 = vector.load %arg1[%c6, %c0_29, %c0_30] : memref<8x4x128xf32, #tpu.memory_space<vmem>>, vector<1x4x128xf32>
    %64 = vector.shape_cast %63 : vector<1x4x128xf32> to vector<4x128xf32>
    %cst_31 = arith.constant dense<0.000000e+00> : vector<32x128xf32>
    %65 = tpu.matmul %0, %64, %cst_31 {dimension_numbers = #tpu.dot_dimension_numbers<[1], [0], [0], [1], [0, 0, 1, 1], [], []>} : vector<32x4xf32>, vector<4x128xf32>, vector<32x128xf32> -> vector<32x128xf32>
    %66 = vector.broadcast %1 : vector<32x1xf32> to vector<32x128xf32>
    %67 = arith.addf %65, %66 : vector<32x128xf32>
    %68 = math.tanh %67 : vector<32x128xf32>
    %69 = vector.broadcast %2 : vector<32x1xf32> to vector<32x128xf32>
    %70 = arith.mulf %68, %69 : vector<32x128xf32>
    %cst_32 = arith.constant dense<0.000000e+00> : vector<128xf32>
    %71 = vector.multi_reduction <add>, %70, %cst_32 [0] : vector<32x128xf32> to vector<128xf32>
    %72 = vector.shape_cast %71 : vector<128xf32> to vector<1x128xf32>
    %c7 = arith.constant 7 : index
    %c0_33 = arith.constant 0 : index
    %c0_34 = arith.constant 0 : index
    %73 = vector.load %arg1[%c7, %c0_33, %c0_34] : memref<8x4x128xf32, #tpu.memory_space<vmem>>, vector<1x4x128xf32>
    %74 = vector.shape_cast %73 : vector<1x4x128xf32> to vector<4x128xf32>
    %cst_35 = arith.constant dense<0.000000e+00> : vector<32x128xf32>
    %75 = tpu.matmul %0, %74, %cst_35 {dimension_numbers = #tpu.dot_dimension_numbers<[1], [0], [0], [1], [0, 0, 1, 1], [], []>} : vector<32x4xf32>, vector<4x128xf32>, vector<32x128xf32> -> vector<32x128xf32>
    %76 = vector.broadcast %1 : vector<32x1xf32> to vector<32x128xf32>
    %77 = arith.addf %75, %76 : vector<32x128xf32>
    %78 = math.tanh %77 : vector<32x128xf32>
    %79 = vector.broadcast %2 : vector<32x1xf32> to vector<32x128xf32>
    %80 = arith.mulf %78, %79 : vector<32x128xf32>
    %cst_36 = arith.constant dense<0.000000e+00> : vector<128xf32>
    %81 = vector.multi_reduction <add>, %80, %cst_36 [0] : vector<32x128xf32> to vector<128xf32>
    %82 = vector.shape_cast %81 : vector<128xf32> to vector<1x128xf32>
    %83 = tpu.concatenate %12, %22, %32, %42, %52, %62, %72, %82 in 0 : vector<1x128xf32>, vector<1x128xf32>, vector<1x128xf32>, vector<1x128xf32>, vector<1x128xf32>, vector<1x128xf32>, vector<1x128xf32>, vector<1x128xf32> -> vector<8x128xf32>
    %cst_37 = arith.constant dense<0xFF800000> : vector<128xf32>
    %84 = vector.multi_reduction <maximumf>, %83, %cst_37 [0] : vector<8x128xf32> to vector<128xf32>
    %85 = vector.shape_cast %84 : vector<128xf32> to vector<1x128xf32>
    %86 = vector.broadcast %85 : vector<1x128xf32> to vector<8x128xf32>
    %87 = arith.subf %83, %86 : vector<8x128xf32>
    %88 = math.exp %87 : vector<8x128xf32>
    %cst_38 = arith.constant dense<0.000000e+00> : vector<128xf32>
    %89 = vector.multi_reduction <add>, %88, %cst_38 [0] : vector<8x128xf32> to vector<128xf32>
    %90 = vector.shape_cast %89 : vector<128xf32> to vector<1x128xf32>
    %91 = tpu.reciprocal %90 : vector<1x128xf32> -> vector<1x128xf32>
    %92 = vector.broadcast %91 : vector<1x128xf32> to vector<8x128xf32>
    %93 = arith.mulf %88, %92 : vector<8x128xf32>
    %c0_39 = arith.constant 0 : index
    %c0_40 = arith.constant 0 : index
    %94 = vector.load %arg5[%c0_39, %c0_40] : memref<8x128xf32, #tpu.memory_space<vmem>>, vector<8x128xf32>
    tpu.vector_store %arg5[%c0_39, %c0_40], %93 {strides = array<i32>} : memref<8x128xf32, #tpu.memory_space<vmem>>, vector<8x128xf32>,
    return
  }
  func.func @transform_0(%arg0: i32) -> (i32, i32, i32) {
    %c0_i32 = arith.constant 0 : i32
    %c0_i32_0 = arith.constant 0 : i32
    %c0_i32_1 = arith.constant 0 : i32
    return %c0_i32, %c0_i32_0, %arg0 : i32, i32, i32
  }
  func.func @transform_1(%arg0: i32) -> (i32, i32) {
    %c0_i32 = arith.constant 0 : i32
    %c0_i32_0 = arith.constant 0 : i32
    %c0_i32_1 = arith.constant 0 : i32
    return %c0_i32, %c0_i32_0 : i32, i32
  }
  func.func @transform_2(%arg0: i32) -> (i32, i32) {
    %c0_i32 = arith.constant 0 : i32
    %c0_i32_0 = arith.constant 0 : i32
    %c0_i32_1 = arith.constant 0 : i32
    return %c0_i32, %c0_i32_0 : i32, i32
  }
  func.func @transform_3(%arg0: i32) -> (i32, i32) {
    %c0_i32 = arith.constant 0 : i32
    %c0_i32_0 = arith.constant 0 : i32
    %c0_i32_1 = arith.constant 0 : i32
    return %c0_i32, %c0_i32_0 : i32, i32
  }
  func.func @transform_4(%arg0: i32) -> (i32, i32) {
    %c0_i32 = arith.constant 0 : i32
    %c0_i32_0 = arith.constant 0 : i32
    return %c0_i32, %arg0 : i32, i32
  }
}

</mosaic_0001>

<bundles_post_ra>
// kernel: tpu_custom_call.1
= control target key start
LH: loop header
LB: loop body
LE: loop exit
PB: predicated region body
PF: predicated region fallthrough
CT: control target
= control target key end

     0   :  { %vm64_vm0 = vcmask 1043456   ;;  %vm51_vm1 = vcmask 31744   ;;  %s1480_s0 = inlined_call_operand.vmem [shape: f32[8,4,128], index: 0, kind: input, shape index: {}]   ;;  %s1481_s1 = inlined_call_operand.vmem [shape: f32[32,4], index: 1, kind: input, shape index: {}]   ;;  %s1482_s2 = inlined_call_operand.vmem [shape: f32[32,1], index: 2, kind: input, shape index: {}]   ;;  %s1483_s3 = inlined_call_operand.vmem [shape: f32[32,1], index: 3, kind: input, shape index: {}]   ;;  %s1484_s4 = inlined_call_operand.hbm [shape: f32[8,128], index: 4, kind: output, shape index: {}]  }
   0x1   :  { %v30_v0 = vld [vmem:[%s1480_s0] sm:$0xf]  ;;  %v989_v1 = vld [vmem:[%s1480_s0 + $0x4] sm:$0xf]  ;;  %v1274_v3 = vld [vmem:[%s1481_s1 + $0x8] sm:$0xff] }
   0x2   :  { %v1267_v2 = vld [vmem:[%s1481_s1] sm:$0xff]  ;;  %1071 = vmatprep.subr.msk.mxu0 %vm64_vm0, %v30_v0  ;;  %1079 = vmatprep.subr.msk.mxu1 %vm64_vm0, %v989_v1  ;;  %v995_v4 = vld [vmem:[%s1480_s0 + $0x8] sm:$0xf]  ;;  %v1001_v5 = vld [vmem:[%s1480_s0 + $0xc] sm:$0xf] }
   0x3   :  { %1072 = vmatpush3.msk.msra.mxu0 %vm64_vm0, %v30_v0  ;;  %1073 = vmatprep.mubr.msk.f32.mxu0 %vm51_vm1, %v1267_v2  ;;  %v20_v6 = vld [vmem:[%s1481_s1 + $0x10] sm:$0xff]  ;;  %v21_v7 = vld [vmem:[%s1481_s1 + $0x18] sm:$0xff] }
   0x4   :  { %1080 = vmatpush3.msk.msra.mxu1 %vm64_vm0, %v989_v1  ;;  %1081 = vmatprep.mubr.msk.f32.mxu1 %vm51_vm1, %v1267_v2 }
   0x5   :  { %1074 = vmatmul.mubr.msk.f32.vlgmr.msra.gmra.mrb[0].mxu0 %vm51_vm1, %v1274_v3  ;;  %1082 = vmatmul.mubr.msk.f32.vlgmr.msra.gmra.mrb[0].mxu1 %vm51_vm1, %v1274_v3 }
   0x6   :  { %1087 = vmatprep.subr.msk.mxu0 %vm64_vm0, %v995_v4  ;;  %1095 = vmatprep.subr.msk.mxu1 %vm64_vm0, %v1001_v5 }
   0x7   :  { %1088 = vmatpush3.msk.msra.mxu0 %vm64_vm0, %v995_v4  ;;  %1096 = vmatpush3.msk.msra.mxu1 %vm64_vm0, %v1001_v5 }
   0x8   :  { %9 = vsyncpa [#allocation3], 0  ;;  %1076 = vmatprep.mubr.msk.f32.mxu0 %vm51_vm1, %v20_v6  ;;  %1084 = vmatprep.mubr.msk.f32.mxu1 %vm51_vm1, %v20_v6  ;;  %v1007_v8 = vld [vmem:[%s1480_s0 + $0x10] sm:$0xf]  ;;  %v1013_v9 = vld [vmem:[%s1480_s0 + $0x14] sm:$0xf] }
   0x9   :  { %1077 = vmatmul.mubr.msk.f32.gmra.mrb[2].mxu0 %vm51_vm1, %v21_v7  ;;  %1085 = vmatmul.mubr.msk.f32.gmra.mrb[2].mxu1 %vm51_vm1, %v21_v7  ;;  %v1231_v10 = vmov 0   ;;  %v1019_v11 = vld [vmem:[%s1480_s0 + $0x18] sm:$0xf]  ;;  %v1025_v12 = vld [vmem:[%s1480_s0 + $0x1c] sm:$0xf]  ;;  %v22_v13 = vld [vmem:[%s1482_s2] sm:$0xff] }
   0xa   :  { %1089 = vmatprep.mubr.msk.f32.mxu0 %vm51_vm1, %v1267_v2  ;;  %1097 = vmatprep.mubr.msk.f32.mxu1 %vm51_vm1, %v1267_v2  ;;  %v24_v14 = vld [vmem:[%s1482_s2 + $0x10] sm:$0xff]  ;;  %v23_v15 = vld [vmem:[%s1482_s2 + $0x8] sm:$0xff]  ;;  %v25_v16 = vld [vmem:[%s1482_s2 + $0x18] sm:$0xff]  ;;  %vm939_vm2 = vcmask 1040384   ;;  %vm941_vm3 = vcmask 1041408   ;;  %vm943_vm4 = vcmask 1042432  }
   0xb   :  { %1103 = vmatprep.subr.msk.mxu0 %vm64_vm0, %v1007_v8  ;;  %1111 = vmatprep.subr.msk.mxu1 %vm64_vm0, %v1013_v9  ;;  %v27_v17 = vld [vmem:[%s1483_s3 + $0x8] sm:$0xff]  ;;  %v26_v18 = vld [vmem:[%s1483_s3] sm:$0xff]  ;;  %v29_v19 = vld [vmem:[%s1483_s3 + $0x18] sm:$0xff]  ;;  %vm946_vm5 = vcmask 1044480   ;;  %vm948_vm6 = vcmask 1045504   ;;  %vm950_vm7 = vcmask 1046528  }
   0xc   :  { %1137 = vset.pattern.permute.xlu0 %v1231_v10  ;;  %1138 = vset.pattern.permute.xlu1 %v1231_v10  ;;  %v28_v20 = vld [vmem:[%s1483_s3 + $0x10] sm:$0xff]  ;;  %s1232_s3 = smov [#allocation2]  }
   0xd   :  { %1090 = vmatmul.mubr.msk.f32.vlgmr.msra.gmra.mrb[4].mxu0 %vm51_vm1, %v1274_v3  ;;  %1098 = vmatmul.mubr.msk.f32.vlgmr.msra.gmra.mrb[4].mxu1 %vm51_vm1, %v1274_v3  ;;  %s976_s26 = sshll.u32 %s1232_s3, 4  ;;  %s977_s26 = int_to_ptr.vmem [resolvable:$true] %s976_s26 }
   0xe   :  { %1104 = vmatpush3.msk.msra.mxu0 %vm64_vm0, %v1007_v8  ;;  %1112 = vmatpush3.msk.msra.mxu1 %vm64_vm0, %v1013_v9  ;;  %s1207_s27 = scalar_lea.vmem %s977_s26, 128  ;;  %p1212_p1 = scmp.lt.s32.totalorder %s977_s26, %s977_s26 }
   0xf   :  { %1092 = vmatprep.mubr.msk.f32.mxu0 %vm51_vm1, %v20_v6  ;;  %1100 = vmatprep.mubr.msk.f32.mxu1 %vm51_vm1, %v20_v6  ;;  %p1208_p0 = scmp.ne.s32.totalorder %s977_s26, %s1207_s27  ;;  %p1213_p2 = scmp.lt.s32.totalorder %s1207_s27, %s1207_s27 }
  0x10   :  { %1119 = vmatprep.subr.msk.mxu0 %vm64_vm0, %v1019_v11  ;;  %1127 = vmatprep.subr.msk.mxu1 %vm64_vm0, %v1025_v12 }
  0x11   :  { %1093 = vmatmul.mubr.msk.f32.gmra.mrb[6].mxu0 %vm51_vm1, %v21_v7  ;;  %1101 = vmatmul.mubr.msk.f32.gmra.mrb[6].mxu1 %vm51_vm1, %v21_v7  ;;  %p1214_p3 = por %p1213_p2, %p1212_p1 }
  0x12   :  { %1105 = vmatprep.mubr.msk.f32.mxu0 %vm51_vm1, %v1267_v2  ;;  %1113 = vmatprep.mubr.msk.f32.mxu1 %vm51_vm1, %v1267_v2 }
  0x13   :  { %33 = vperm.xlu0 %1137, %v22_v13   ;;  %43 = vperm.xlu1 %1138, %v24_v14   ;;  %p1215_p4 = pnand %p1214_p3, %p1208_p0 }
  0x15   :  { %1106 = vmatmul.mubr.msk.f32.vlgmr.msra.gmra.mrb[8].mxu0 %vm51_vm1, %v1274_v3  ;;  %1114 = vmatmul.mubr.msk.f32.vlgmr.msra.gmra.mrb[8].mxu1 %vm51_vm1, %v1274_v3 }
  0x16   :  { %1120 = vmatpush3.msk.msra.mxu0 %vm64_vm0, %v1019_v11  ;;  %1128 = vmatpush3.msk.msra.mxu1 %vm64_vm0, %v1025_v12 }
  0x17   :  { %1108 = vmatprep.mubr.msk.f32.mxu0 %vm51_vm1, %v20_v6  ;;  %1116 = vmatprep.mubr.msk.f32.mxu1 %vm51_vm1, %v20_v6 }
  0x18   :  { %38 = vperm.xlu0 %1137, %v23_v15   ;;  %48 = vperm.xlu1 %1138, %v25_v16  }
  0x19   :  { %1109 = vmatmul.mubr.msk.f32.gmra.mrb[10].mxu0 %vm51_vm1, %v21_v7  ;;  %1117 = vmatmul.mubr.msk.f32.gmra.mrb[10].mxu1 %vm51_vm1, %v21_v7 }
  0x1a   :  { %1121 = vmatprep.mubr.msk.f32.mxu0 %vm51_vm1, %v1267_v2  ;;  %1129 = vmatprep.mubr.msk.f32.mxu1 %vm51_vm1, %v1267_v2 }
  0x1c   :  { %164 = vperm.xlu1 %1138, %v27_v17   ;;  %159 = vperm.xlu0 %1137, %v26_v18  }
  0x1d   :  { %1122 = vmatmul.mubr.msk.f32.vlgmr.msra.gmra.mrb[12].mxu0 %vm51_vm1, %v1274_v3  ;;  %1130 = vmatmul.mubr.msk.f32.vlgmr.msra.gmra.mrb[12].mxu1 %vm51_vm1, %v1274_v3 }
  0x1e   :  { %1124 = vmatprep.mubr.msk.f32.mxu0 %vm51_vm1, %v20_v6  ;;  %1132 = vmatprep.mubr.msk.f32.mxu1 %vm51_vm1, %v20_v6 }
  0x20   :  { %174 = vperm.xlu1 %1138, %v29_v19   ;;  %169 = vperm.xlu0 %1137, %v28_v20  }
  0x21   :  { %1125 = vmatmul.mubr.msk.f32.gmra.mrb[14].mxu0 %vm51_vm1, %v21_v7  ;;  %1133 = vmatmul.mubr.msk.f32.gmra.mrb[14].mxu1 %vm51_vm1, %v21_v7 }
  0x92   :  { %v1386_v21 = vpop.permute.xlu0 %33  ;;  %v1388_v22 = vpop.permute.xlu1 %43 }
  0x97   :  { %v1390_v23 = vpop.permute.xlu0 %38  ;;  %v1396_v32 = vpop.permute.xlu1 %48 }
  0x9b   :  { %v1402_v41 = vpop.permute.xlu1 %164  ;;  %v1404_v42 = vpop.permute.xlu0 %159 }
  0x9f   :  { %v1416_v0 = vpop.permute.xlu1 %174  ;;  %v1418_v1 = vpop.permute.xlu0 %169 }
  0xd8   :  { %v1075_v24 = vpop.f32.mrb[0].mxu0  ;;  %v1083_v25 = vpop.f32.mrb[0].mxu1 }
  0xd9   :  { %v140_v26 = vadd.f32 %v1075_v24, %v1390_v23  ;;  %v134_v27 = vpop.f32.mrb[1].mxu0  ;;  %v267_v28 = vadd.f32 %v1083_v25, %v1390_v23  ;;  %v261_v29 = vpop.f32.mrb[1].mxu1 }
  0xda   :  { %v135_v30 = vadd.f32 %v134_v27, %v1386_v21  ;;  %v262_v31 = vadd.f32 %v261_v29, %v1386_v21 }
  0xdb   :  { %1139 = vtanh.f32 %v140_v26 }
  0xdc   :  { %1141 = vtanh.f32 %v135_v30  ;;  %v1078_v33 = vpop.f32.mrb[2].mxu0  ;;  %v1086_v34 = vpop.f32.mrb[2].mxu1 }
  0xdd   :  { %1143 = vtanh.f32 %v267_v28  ;;  %v150_v35 = vadd.f32 %v1078_v33, %v1396_v32  ;;  %v277_v36 = vadd.f32 %v1086_v34, %v1396_v32  ;;  %v144_v37 = vpop.f32.mrb[3].mxu0  ;;  %v271_v38 = vpop.f32.mrb[3].mxu1 }
  0xde   :  { %1145 = vtanh.f32 %v262_v31  ;;  %v145_v39 = vadd.f32 %v144_v37, %v1388_v22  ;;  %v272_v40 = vadd.f32 %v271_v38, %v1388_v22 }
  0xdf   :  { %1147 = vtanh.f32 %v150_v35 }
  0xe0   :  { %1149 = vtanh.f32 %v277_v36  ;;  %v1091_v43 = vpop.f32.mrb[4].mxu0  ;;  %v1099_v44 = vpop.f32.mrb[4].mxu1 }
  0xe1   :  { %1151 = vtanh.f32 %v145_v39  ;;  %v374_v45 = vadd.f32 %v1091_v43, %v1390_v23  ;;  %v481_v46 = vadd.f32 %v1099_v44, %v1390_v23  ;;  %v368_v47 = vpop.f32.mrb[5].mxu0  ;;  %v475_v48 = vpop.f32.mrb[5].mxu1 }
  0xe2   :  { %1153 = vtanh.f32 %v272_v40  ;;  %v369_v49 = vadd.f32 %v368_v47, %v1386_v21  ;;  %v476_v50 = vadd.f32 %v475_v48, %v1386_v21 }
  0xe3   :  { %1155 = vtanh.f32 %v374_v45 }
  0xe4   :  { %1157 = vtanh.f32 %v481_v46  ;;  %v1094_v51 = vpop.f32.mrb[6].mxu0  ;;  %v1102_v52 = vpop.f32.mrb[6].mxu1 }
  0xe5   :  { %v1140_v53 = vpop.eup %1139  ;;  %1159 = vtanh.f32 %v369_v49  ;;  %v384_v54 = vadd.f32 %v1094_v51, %v1396_v32  ;;  %v491_v55 = vadd.f32 %v1102_v52, %v1396_v32  ;;  %v378_v56 = vpop.f32.mrb[7].mxu0 }
  0xe6   :  { %v485_v57 = vpop.f32.mrb[7].mxu1  ;;  %v1142_v58 = vpop.eup %1141  ;;  %1161 = vtanh.f32 %v476_v50  ;;  %v379_v59 = vadd.f32 %v378_v56, %v1388_v22  ;;  %v178_v62 = vmul.f32 %v1140_v53, %v1402_v41 }
  0xe7   :  { %v486_v60 = vadd.f32 %v485_v57, %v1388_v22  ;;  %v1144_v61 = vpop.eup %1143  ;;  %1163 = vtanh.f32 %v384_v54  ;;  %v177_v63 = vmul.f32 %v1142_v58, %v1404_v42 }
  0xe8   :  { %v1146_v2 = vpop.eup %1145  ;;  %1165 = vtanh.f32 %v491_v55  ;;  %v285_v3 = vmul.f32 %v1144_v61, %v1402_v41  ;;  %v1107_v4 = vpop.f32.mrb[8].mxu0 }
  0xe9   :  { %v1115_v5 = vpop.f32.mrb[8].mxu1  ;;  %v1148_v6 = vpop.eup %1147  ;;  %1167 = vtanh.f32 %v379_v59  ;;  %v284_v7 = vmul.f32 %v1146_v2, %v1404_v42  ;;  %v588_v8 = vadd.f32 %v1107_v4, %v1390_v23  ;;  %v181_v16 = vadd.f32 %v178_v62, %v177_v63 }
  0xea   :  { %v695_v9 = vadd.f32 %v1115_v5, %v1390_v23  ;;  %v582_v10 = vpop.f32.mrb[9].mxu0  ;;  %v689_v11 = vpop.f32.mrb[9].mxu1  ;;  %1169 = vtanh.f32 %v486_v60  ;;  %v180_v19 = vmul.f32 %v1148_v6, %v1416_v0 }
  0xeb   :  { %v1150_v12 = vpop.eup %1149  ;;  %v583_v13 = vadd.f32 %v582_v10, %v1386_v21  ;;  %v690_v14 = vadd.f32 %v689_v11, %v1386_v21  ;;  %1171 = vtanh.f32 %v588_v8  ;;  %v288_v17 = vadd.f32 %v285_v3, %v284_v7 }
  0xec   :  { %v1152_v15 = vpop.eup %1151  ;;  %1173 = vtanh.f32 %v695_v9  ;;  %v287_v20 = vmul.f32 %v1150_v12, %v1416_v0  ;;  %v1110_v25 = vpop.f32.mrb[10].mxu0 }
  0xed   :  { %v1154_v18 = vpop.eup %1153  ;;  %v179_v24 = vmul.f32 %v1152_v15, %v1418_v1  ;;  %v1118_v26 = vpop.f32.mrb[10].mxu1  ;;  %1175 = vtanh.f32 %v583_v13  ;;  %v598_v29 = vadd.f32 %v1110_v25, %v1396_v32 }
  0xee   :  { %v1156_v27 = vpop.eup %1155  ;;  %v286_v28 = vmul.f32 %v1154_v18, %v1418_v1  ;;  %v705_v30 = vadd.f32 %v1118_v26, %v1396_v32  ;;  %v592_v31 = vpop.f32.mrb[11].mxu0  ;;  %1177 = vtanh.f32 %v690_v14 }
  0xef   :  { %v699_v33 = vpop.f32.mrb[11].mxu1  ;;  %v1158_v34 = vpop.eup %1157  ;;  %v392_v35 = vmul.f32 %v1156_v27, %v1402_v41  ;;  %v182_v36 = vadd.f32 %v181_v16, %v179_v24  ;;  %v593_v37 = vadd.f32 %v592_v31, %v1388_v22  ;;  %1179 = vtanh.f32 %v598_v29 }
  0xf0   :  { %v1160_v38 = vpop.eup %1159  ;;  %v499_v39 = vmul.f32 %v1158_v34, %v1402_v41  ;;  %v289_v40 = vadd.f32 %v288_v17, %v286_v28  ;;  %v700_v43 = vadd.f32 %v699_v33, %v1388_v22  ;;  %1181 = vtanh.f32 %v705_v30  ;;  %v1123_v47 = vpop.f32.mrb[12].mxu0 }
  0xf1   :  { %v1162_v44 = vpop.eup %1161  ;;  %v391_v45 = vmul.f32 %v1160_v38, %v1404_v42  ;;  %v183_v46 = vadd.f32 %v182_v36, %v180_v19  ;;  %v1131_v48 = vpop.f32.mrb[12].mxu1  ;;  %1183 = vtanh.f32 %v593_v37  ;;  %v802_v52 = vadd.f32 %v1123_v47, %v1390_v23 }
  0xf2   :  { %v1164_v49 = vpop.eup %1163  ;;  %v498_v50 = vmul.f32 %v1162_v44, %v1404_v42  ;;  %v290_v51 = vadd.f32 %v289_v40, %v287_v20  ;;  %v796_v53 = vpop.f32.mrb[13].mxu0  ;;  %1185 = vtanh.f32 %v700_v43  ;;  %v909_v4 = vadd.f32 %v1131_v48, %v1390_v23 }
  0xf3   :  { %v903_v54 = vpop.f32.mrb[13].mxu1  ;;  %v1166_v55 = vpop.eup %1165  ;;  %v394_v56 = vmul.f32 %v1164_v49, %v1416_v0  ;;  %v184_v57 = vrot.slane %v183_v46, 4  ;;  %v395_v58 = vadd.f32 %v392_v35, %v391_v45  ;;  %1187 = vtanh.f32 %v802_v52 }
  0xf4   :  { %v1168_v59 = vpop.eup %1167  ;;  %v501_v60 = vmul.f32 %v1166_v55, %v1416_v0  ;;  %v291_v61 = vrot.slane %v290_v51, 4  ;;  %v502_v62 = vadd.f32 %v499_v39, %v498_v50  ;;  %v797_v5 = vadd.f32 %v796_v53, %v1386_v21  ;;  %v1126_v6 = vpop.f32.mrb[14].mxu0 }
  0xf5   :  { %v1170_v63 = vpop.eup %1169  ;;  %v185_v2 = vadd.f32 %v184_v57, %v183_v46  ;;  %v393_v3 = vmul.f32 %v1168_v59, %v1418_v1  ;;  %v1134_v7 = vpop.f32.mrb[14].mxu1  ;;  %v904_v11 = vadd.f32 %v903_v54, %v1386_v21  ;;  %v812_v12 = vadd.f32 %v1126_v6, %v1396_v32 }
  0xf6   :  { %v1172_v8 = vpop.eup %1171  ;;  %v292_v9 = vadd.f32 %v291_v61, %v290_v51  ;;  %v500_v10 = vmul.f32 %v1170_v63, %v1418_v1  ;;  %v806_v13 = vpop.f32.mrb[15].mxu0  ;;  %1189 = vtanh.f32 %v909_v4  ;;  %v919_v47 = vadd.f32 %v1134_v7, %v1396_v32 }
  0xf7   :  { %v913_v14 = vpop.f32.mrb[15].mxu1  ;;  %v1174_v15 = vpop.eup %1173  ;;  %v606_v16 = vmul.f32 %v1172_v8, %v1402_v41  ;;  %v186_v17 = vrot.slane %v185_v2, 2  ;;  %v396_v18 = vadd.f32 %v395_v58, %v393_v3  ;;  %1191 = vtanh.f32 %v797_v5 }
  0xf8   :  { %v1176_v23 = vpop.eup %1175  ;;  %v713_v19 = vmul.f32 %v1174_v15, %v1402_v41  ;;  %v293_v20 = vrot.slane %v292_v9, 2  ;;  %v503_v24 = vadd.f32 %v502_v62, %v500_v10  ;;  %1193 = vtanh.f32 %v904_v11 }
  0xf9   :  { %v1178_v25 = vpop.eup %1177  ;;  %v605_v26 = vmul.f32 %v1176_v23, %v1404_v42  ;;  %v187_v21 = vadd.f32 %v186_v17, %v185_v2  ;;  %v397_v27 = vadd.f32 %v396_v18, %v394_v56  ;;  %1195 = vtanh.f32 %v812_v12 }
  0xfa   :  { %v1180_v28 = vpop.eup %1179  ;;  %v712_v29 = vmul.f32 %v1178_v25, %v1404_v42  ;;  %v294_v30 = vadd.f32 %v293_v20, %v292_v9  ;;  %v504_v31 = vadd.f32 %v503_v24, %v501_v60  ;;  %v807_v52 = vadd.f32 %v806_v13, %v1388_v22 }
  0xfb   :  { %v1182_v33 = vpop.eup %1181  ;;  %v609_v34 = vadd.f32 %v606_v16, %v605_v26  ;;  %v188_v35 = vrot.slane %v187_v21, 1  ;;  %v398_v36 = vrot.slane %v397_v27, 4  ;;  %v608_v54 = vmul.f32 %v1180_v28, %v1416_v0 }
  0xfc   :  { %v1184_v37 = vpop.eup %1183  ;;  %v716_v38 = vadd.f32 %v713_v19, %v712_v29  ;;  %v295_v39 = vrot.slane %v294_v30, 1  ;;  %v505_v40 = vrot.slane %v504_v31, 4  ;;  %v715_v55 = vmul.f32 %v1182_v33, %v1416_v0 }
  0xfd   :  { %v1186_v43 = vpop.eup %1185  ;;  %v189_v44 = vadd.f32 %v188_v35, %v187_v21  ;;  %v399_v45 = vadd.f32 %v398_v36, %v397_v27  ;;  %v607_v46 = vmul.f32 %v1184_v37, %v1418_v1  ;;  %1197 = vtanh.f32 %v807_v52 }
  0xfe   :  { %v1188_v48 = vpop.eup %1187  ;;  %v296_v49 = vadd.f32 %v295_v39, %v294_v30  ;;  %v506_v50 = vadd.f32 %v505_v40, %v504_v31  ;;  %v714_v51 = vmul.f32 %v1186_v43, %v1418_v1  ;;  %v914_v63 = vadd.f32 %v913_v14, %v1388_v22 }
  0xff   :  { %v400_v53 = vrot.slane %v399_v45, 2  ;;  %v610_v56 = vadd.f32 %v609_v34, %v607_v46  ;;  %v820_v62 = vmul.f32 %v1188_v48, %v1402_v41  ;;  %1199 = vtanh.f32 %v919_v47 }
 0x100   :  { %v507_v57 = vrot.slane %v506_v50, 2  ;;  %v940_v58 = vsel %vm939_vm2, %v189_v44, %v296_v49  ;;  %v717_v59 = vadd.f32 %v716_v38, %v714_v51  ;;  %v1190_v60 = vpop.eup %1189  ;;  %1201 = vtanh.f32 %v914_v63 }
 0x101   :  { %v401_v32 = vadd.f32 %v400_v53, %v399_v45  ;;  %v611_v61 = vadd.f32 %v610_v56, %v608_v54  ;;  %v1192_v2 = vpop.eup %1191  ;;  %v927_v5 = vmul.f32 %v1190_v60, %v1402_v41 }
 0x102   :  { %v508_v3 = vadd.f32 %v507_v57, %v506_v50  ;;  %v718_v4 = vadd.f32 %v717_v59, %v715_v55  ;;  %v1194_v6 = vpop.eup %1193  ;;  %v819_v9 = vmul.f32 %v1192_v2, %v1404_v42 }
 0x103   :  { %v402_v7 = vrot.slane %v401_v32, 1  ;;  %v612_v8 = vrot.slane %v611_v61, 4  ;;  %v926_v12 = vmul.f32 %v1194_v6, %v1404_v42  ;;  %v1196_v14 = vpop.eup %1195 }
 0x104   :  { %v509_v10 = vrot.slane %v508_v3, 1  ;;  %v719_v11 = vrot.slane %v718_v4, 4  ;;  %v823_v22 = vadd.f32 %v820_v62, %v819_v9  ;;  %v822_v31 = vmul.f32 %v1196_v14, %v1416_v0 }
 0x105   :  { %v403_v13 = vadd.f32 %v402_v7, %v401_v32  ;;  %v613_v15 = vadd.f32 %v612_v8, %v611_v61  ;;  %v930_v41 = vadd.f32 %v927_v5, %v926_v12 }
 0x106   :  { %v510_v16 = vadd.f32 %v509_v10, %v508_v3  ;;  %v720_v17 = vadd.f32 %v719_v11, %v718_v4 }
 0x107   :  { %v942_v18 = vsel %vm941_vm3, %v940_v58, %v403_v13  ;;  %v614_v23 = vrot.slane %v613_v15, 2  ;;  %v1198_v25 = vpop.eup %1197 }
 0x108   :  { %v944_v19 = vsel %vm943_vm4, %v942_v18, %v510_v16  ;;  %v721_v20 = vrot.slane %v720_v17, 2  ;;  %v821_v27 = vmul.f32 %v1198_v25, %v1418_v1 }
 0x109   :  { %v615_v24 = vadd.f32 %v614_v23, %v613_v15  ;;  %v1200_v28 = vpop.eup %1199 }
 0x10a   :  { %v722_v26 = vadd.f32 %v721_v20, %v720_v17  ;;  %v1202_v29 = vpop.eup %1201  ;;  %v824_v33 = vadd.f32 %v823_v22, %v821_v27  ;;  %v929_v39 = vmul.f32 %v1200_v28, %v1416_v0 }
 0x10b   :  { %v616_v21 = vrot.slane %v615_v24, 1  ;;  %v928_v35 = vmul.f32 %v1202_v29, %v1418_v1 }
 0x10c   :  { %v723_v42 = vrot.slane %v722_v26, 1  ;;  %v825_v37 = vadd.f32 %v824_v33, %v822_v31 }
 0x10d   :  { %v617_v30 = vadd.f32 %v616_v21, %v615_v24  ;;  %v931_v40 = vadd.f32 %v930_v41, %v928_v35 }
 0x10e   :  { %v724_v34 = vadd.f32 %v723_v42, %v722_v26  ;;  %v826_v43 = vrot.slane %v825_v37, 4 }
 0x10f   :  { %v945_v36 = vsel %vm64_vm0, %v944_v19, %v617_v30  ;;  %v932_v44 = vadd.f32 %v931_v40, %v929_v39 }
 0x110   :  { %v947_v38 = vsel %vm946_vm5, %v945_v36, %v724_v34  ;;  %v827_v45 = vadd.f32 %v826_v43, %v825_v37 }
 0x111   :  { %v933_v46 = vrot.slane %v932_v44, 4 }
 0x112   :  { %v828_v47 = vrot.slane %v827_v45, 2 }
 0x113   :  { %v934_v48 = vadd.f32 %v933_v46, %v932_v44 }
 0x114   :  { %v829_v49 = vadd.f32 %v828_v47, %v827_v45 }
 0x115   :  { %v935_v50 = vrot.slane %v934_v48, 2 }
 0x116   :  { %v830_v51 = vrot.slane %v829_v49, 1 }
 0x117   :  { %v936_v52 = vadd.f32 %v935_v50, %v934_v48 }
 0x118   :  { %v831_v53 = vadd.f32 %v830_v51, %v829_v49 }
 0x119   :  { %v937_v1 = vrot.slane %v936_v52, 1 }
 0x11a   :  { %v949_v54 = vsel %vm948_vm6, %v947_v38, %v831_v53 }
 0x11b   :  { %v938_v55 = vadd.f32 %v937_v1, %v936_v52 }
 0x11d   :  { %v951_v56 = vsel %vm950_vm7, %v949_v54, %v938_v55 }
 0x11e   :  { %v952_v57 = vrot.slane %v951_v56, 4 }
 0x120   :  { %v953_v0 = vmax.f32 %v951_v56, %v952_v57 }
 0x122   :  { %v954_v58 = vrot.slane %v953_v0, 2 }
 0x124   :  { %v955_v59 = vmax.f32 %v953_v0, %v954_v58 }
 0x126   :  { %v956_v60 = vrot.slane %v955_v59, 1 }
 0x128   :  { %v957_v32 = vmax.f32 %v955_v59, %v956_v60 }
 0x12a   :  { %v958_v61 = vsub.f32 %v951_v56, %v957_v32 }
 0x12c   :  { %v959_v62 = vmul.f32 1.442695, %v958_v61 }
 0x12e   :  { %1203 = vpow2.f32 %v959_v62 }
 0x138   :  { %v1204_v63 = vpop.eup %1203 }
 0x139   :  { %v961_v2 = vrot.slane %v1204_v63, 4 }
 0x13b   :  { %v962_v3 = vadd.f32 %v1204_v63, %v961_v2 }
 0x13d   :  { %v963_v4 = vrot.slane %v962_v3, 2 }
 0x13f   :  { %v964_v5 = vadd.f32 %v963_v4, %v962_v3 }
 0x141   :  { %v965_v6 = vrot.slane %v964_v5, 1 }
 0x143   :  { %v966_v7 = vadd.f32 %v965_v6, %v964_v5 }
 0x145   :  { %1205 = vrcp.f32 %v966_v7 }
 0x14f   :  { %v1206_v8 = vpop.eup %1205 }
 0x150   :  { %v968_v9 = vmul.f32 %v1206_v8, %v1204_v63 }
 0x152   :  { %969 = vst [vmem:[#allocation2] sm:$0xff] %v968_v9 }
 0x153   :  { %1218 = shalt.err (!%p1215_p4)
}
 0x154   :  { %s1219_s30 = scalar_lea.hbm %s1484_s4, 128 }
 0x155   :  { %p1220_p5 = scmp.ne.s32.totalorder %s1484_s4, %s1219_s30  ;;  %p1223_p6 = scmp.lt.u32.totalorder %s1219_s30, %s1484_s4 }
 0x157   :  { %p1225_p7 = pnand %p1223_p6, %p1220_p5 }
 0x159   :  { %1228 = shalt.err (!%p1225_p7)
}
 0x15a   :  { %979 = dma.vmem_to_hbm [thread:$0]  %s977_s26, 128, %s1484_s4, [#allocation3]  }
 0x15b   :  { %1229 = dma.done.wait [#allocation3], 128  }
 0x15c   :  { %1230 = vsyncadd [#allocation3], 4294967168 }
 0x15d   :  { %983 = vsyncpa [#allocation3], 1 }

</bundles_post_ra>
